<compile_context>
chip_gen: v7x
topology: tpu7x:2x2x1
jax: 0.10.0
libtpu: 0.0.40
codegen_flags: <defaults>
</compile_context>

<pallas_src>
import functools

import jax
import jax.numpy as jnp
import numpy as np
from jax.experimental import pallas as pl
from jax.experimental.pallas import tpu as pltpu


def _fold_phase_weights(weight):
    """Fold a 3x3 conv weight (OIHW) into the 4-phase 'subpixel' weight matrix.

    nearest-x2 followed by a 3x3/pad=1 conv satisfies, for phases py,px in {0,1}:
        out[co, 2*oy+py, 2*ox+px] =
            sum_{ci,dy,dx} W[py,px,co,dy,dx,ci] * x[ci, oy+dy-1, ox+dx-1]
    with dy,dx in {0,1,2} and x == 0 outside its bounds.  Only a <=2x2 subset
    of the (dy,dx) taps is non-zero per phase; the rest stay 0 so all four
    phases share one im2col and one matmul.

    Returns (4*Cout, 9*Cin):  rows = (py*2+px)*Cout + co,
                              cols = (dy*3+dx)*Cin + ci.
    """
    Cout, Cin = weight.shape[0], weight.shape[1]
    # taps[(phase, folded offset d)] = original 3x3 tap indices that collapse
    # onto original-resolution offset (d-1) for that output phase.
    taps = {(0, 0): (0,), (0, 1): (1, 2),
            (1, 1): (0, 1), (1, 2): (2,)}
    w_all = jnp.zeros((2, 2, Cout, 3, 3, Cin), weight.dtype)
    for (py, dy), kis in taps.items():
        for (px, dx), kjs in taps.items():
            wk = sum(weight[:, :, ki, kj] for ki in kis for kj in kjs)
            w_all = w_all.at[py, px, :, dy, dx, :].set(wk)
    return w_all.reshape(4 * Cout, 9 * Cin)


def _tap_masks(hi, wi, dtype):
    """(9, Hi*Wi) validity mask per (dy, dx) tap -- this IS the conv padding."""
    oy = np.arange(hi)[:, None]
    ox = np.arange(wi)[None, :]
    masks = []
    for dy in range(3):
        for dx in range(3):
            r = oy + dy - 1
            c = ox + dx - 1
            valid = (r >= 0) & (r < hi) & (c >= 0) & (c < wi)   # (hi, wi)
            masks.append(valid.reshape(-1))
    return jnp.asarray(np.stack(masks, axis=0), dtype=dtype)    # (9, hi*wi)


def _shift_lanes(x, s):
    """out[:, p] = x[:, p + s] (zero-filled outside); s is a static Python int."""
    if s == 0:
        return x
    cin, hw = x.shape
    if s > 0:
        return jnp.concatenate([x[:, s:], jnp.zeros((cin, s), x.dtype)], axis=1)
    return jnp.concatenate([jnp.zeros((cin, -s), x.dtype), x[:, :hw + s]], axis=1)


def _upsample_conv_kernel(x_ref, w_ref, b_ref, m_ref, o_ref, *, wi):
    # x_ref: (1, Cin, Hi*Wi)     original-resolution input (NCHW, HW flattened)
    # w_ref: (4*Cout, 9*Cin)     phase-folded weights
    # b_ref: (4*Cout, 1)         bias, replicated over the 4 phases
    # m_ref: (9, Hi*Wi)          per-tap validity mask (fused zero padding)
    # o_ref: (1, 4*Cout, Hi*Wi)  phase-major output
    x = x_ref[0]                                    # (Cin, HW), HW on lanes
    taps = []
    t = 0
    for dy in range(3):
        for dx in range(3):
            s = (dy - 1) * wi + (dx - 1)            # static lane shift
            taps.append(_shift_lanes(x, s) * m_ref[t:t + 1, :])
            t += 1
    patch = jnp.concatenate(taps, axis=0)           # (9*Cin, HW) im2col in VMEM
    acc = jnp.dot(w_ref[...], patch,                # one MXU matmul, all 4 phases
                  preferred_element_type=jnp.float32)
    acc = acc + b_ref[...]                          # lane-broadcast bias
    o_ref[0] = acc.astype(o_ref.dtype)


def upsample_forward(x_nchw, weight, bias):
    """Equivalent of Upsample.forward: nearest x2 + Conv2d(3, stride=1, pad=1).

    x_nchw: (N, Cin, Hi, Wi)    float32
    weight: (Cout, Cin, 3, 3)   float32 (PyTorch conv weight layout)
    bias:   (Cout,)             float32
    returns (N, Cout, 2*Hi, 2*Wi) float32
    """
    N, Cin, Hi, Wi = x_nchw.shape
    Cout = weight.shape[0]
    HW = Hi * Wi

    w_mat = _fold_phase_weights(weight)                  # (4*Cout, 9*Cin)
    b_mat = jnp.tile(bias, 4).reshape(4 * Cout, 1)       # (4*Cout, 1)
    tap_mask = _tap_masks(Hi, Wi, x_nchw.dtype)          # (9, HW)
    x_flat = x_nchw.reshape(N, Cin, HW)                  # free reshape, stays NCHW

    # TODO(synk): for large spatial inputs (v7x: 64 MiB VMEM) add an H-row-slab
    # grid axis with a 1-row halo instead of one whole image per grid step.
    out_flat = pl.pallas_call(
        functools.partial(_upsample_conv_kernel, wi=Wi),
        out_shape=jax.ShapeDtypeStruct((N, 4 * Cout, HW), x_nchw.dtype),
        grid=(N,),
        in_specs=[
            pl.BlockSpec((1, Cin, HW), lambda n: (n, 0, 0)),
            pl.BlockSpec((4 * Cout, 9 * Cin), lambda n: (0, 0)),
            pl.BlockSpec((4 * Cout, 1), lambda n: (0, 0)),
            pl.BlockSpec((9, HW), lambda n: (0, 0)),
        ],
        out_specs=pl.BlockSpec((1, 4 * Cout, HW), lambda n: (n, 0, 0)),
        compiler_params=pltpu.CompilerParams(
            dimension_semantics=("parallel",)),
    )(x_flat, w_mat, b_mat, tap_mask)

    # Interleave the 4 phases back to NCHW:
    #   out[n, co, 2*oy+py, 2*ox+px] = out_flat[n, (py*2+px)*Cout+co, oy*Wi+ox]
    # This single fused XLA reshape/transpose is the only remaining wrapper
    # pass; no upsampled-resolution activation ever leaves VMEM otherwise.
    out = out_flat.reshape(N, 2, 2, Cout, Hi, Wi)
    out = jnp.transpose(out, (0, 3, 4, 1, 5, 2))         # (N, Cout, Hi, 2, Wi, 2)
    return out.reshape(N, Cout, 2 * Hi, 2 * Wi)


def _reference_forward(x_nchw, weight, bias):
    # Pure-JAX reference: nearest x2 + conv2d (NCHW), matches PyTorch semantics.
    x = jnp.repeat(jnp.repeat(x_nchw, 2, axis=2), 2, axis=3)
    out = jax.lax.conv_general_dilated(
        x, weight, window_strides=(1, 1), padding=((1, 1), (1, 1)),
        dimension_numbers=("NCHW", "OIHW", "NCHW"))
    return out + bias.reshape(1, -1, 1, 1)


if __name__ == "__main__":
    key = jax.random.PRNGKey(0)
    k_x, k_w, k_b = jax.random.split(key, 3)

    N, Cin, H, W = 2, 4, 16, 16
    Cout = 4  # out_channels defaults to channels in the module

    x = jax.random.normal(k_x, (N, Cin, H, W), dtype=jnp.float32)
    # deterministic Conv2d-style init: U(-k, k) with k = 1/sqrt(Cin*3*3)
    bound = 1.0 / np.sqrt(Cin * 3 * 3)
    weight = jax.random.uniform(k_w, (Cout, Cin, 3, 3),
                                minval=-bound, maxval=bound, dtype=jnp.float32)
    bias = jax.random.uniform(k_b, (Cout,),
                              minval=-bound, maxval=bound, dtype=jnp.float32)

    fwd = jax.jit(upsample_forward)
    out = jax.block_until_ready(fwd(x, weight, bias))
    ref = jax.block_until_ready(_reference_forward(x, weight, bias))

    assert out.shape == (N, Cout, 2 * H, 2 * W), out.shape
    np.testing.assert_allclose(np.asarray(out), np.asarray(ref),
                               rtol=1e-5, atol=1e-5)
    print("KERNEL_OK")
</pallas_src>

<mosaic_0001>
module attributes {stable_mosaic.version = 11 : i64} {
  func.func @_upsample_conv_kernel(%arg0: i32, %arg1: memref<1x4x256xf32, #tpu.memory_space<vmem>>, %arg2: memref<16x36xf32, #tpu.memory_space<vmem>>, %arg3: memref<16x1xf32, #tpu.memory_space<vmem>>, %arg4: memref<9x256xf32, #tpu.memory_space<vmem>>, %arg5: memref<1x16x256xf32, #tpu.memory_space<vmem>>) attributes {dimension_semantics = [#tpu.dimension_semantics<parallel>], iteration_bounds = array<i64: 2>, scalar_prefetch = 0 : i64, scratch_operands = 0 : i64, tpu.core_type = #tpu.core_type<tc>, window_params = [{transform_indices = @transform_0, window_bounds = array<i64: 1, 4, 256>}, {pipeline_mode = #tpu.pipeline_mode<synchronous>, transform_indices = @transform_1, window_bounds = array<i64: 16, 36>}, {pipeline_mode = #tpu.pipeline_mode<synchronous>, transform_indices = @transform_2, window_bounds = array<i64: 16, 1>}, {pipeline_mode = #tpu.pipeline_mode<synchronous>, transform_indices = @transform_3, window_bounds = array<i64: 9, 256>}, {transform_indices = @transform_4, window_bounds = array<i64: 1, 16, 256>}]} {
    %c0 = arith.constant 0 : index
    %c0_0 = arith.constant 0 : index
    %c0_1 = arith.constant 0 : index
    %0 = vector.load %arg1[%c0, %c0_0, %c0_1] : memref<1x4x256xf32, #tpu.memory_space<vmem>>, vector<1x4x256xf32>
    %1 = vector.shape_cast %0 : vector<1x4x256xf32> to vector<4x256xf32>
    %cst = arith.constant 0.000000e+00 : f32
    %2 = vector.broadcast %cst : f32 to vector<4x17xf32>
    %3 = vector.extract_strided_slice %1 {offsets = [0, 0], sizes = [4, 239], strides = [1, 1]} : vector<4x256xf32> to vector<4x239xf32>
    %4 = tpu.concatenate %2, %3 in 1 : vector<4x17xf32>, vector<4x239xf32> -> vector<4x256xf32>
    %c0_2 = arith.constant 0 : index
    %c0_3 = arith.constant 0 : index
    %5 = vector.load %arg4[%c0_2, %c0_3] : memref<9x256xf32, #tpu.memory_space<vmem>>, vector<1x256xf32>
    %6 = vector.broadcast %5 : vector<1x256xf32> to vector<4x256xf32>
    %7 = arith.mulf %4, %6 : vector<4x256xf32>
    %cst_4 = arith.constant 0.000000e+00 : f32
    %8 = vector.broadcast %cst_4 : f32 to vector<4x16xf32>
    %9 = vector.extract_strided_slice %1 {offsets = [0, 0], sizes = [4, 240], strides = [1, 1]} : vector<4x256xf32> to vector<4x240xf32>
    %10 = tpu.concatenate %8, %9 in 1 : vector<4x16xf32>, vector<4x240xf32> -> vector<4x256xf32>
    %c1 = arith.constant 1 : index
    %c0_5 = arith.constant 0 : index
    %11 = vector.load %arg4[%c1, %c0_5] : memref<9x256xf32, #tpu.memory_space<vmem>>, vector<1x256xf32>
    %12 = vector.broadcast %11 : vector<1x256xf32> to vector<4x256xf32>
    %13 = arith.mulf %10, %12 : vector<4x256xf32>
    %cst_6 = arith.constant 0.000000e+00 : f32
    %14 = vector.broadcast %cst_6 : f32 to vector<4x15xf32>
    %15 = vector.extract_strided_slice %1 {offsets = [0, 0], sizes = [4, 241], strides = [1, 1]} : vector<4x256xf32> to vector<4x241xf32>
    %16 = tpu.concatenate %14, %15 in 1 : vector<4x15xf32>, vector<4x241xf32> -> vector<4x256xf32>
    %c2 = arith.constant 2 : index
    %c0_7 = arith.constant 0 : index
    %17 = vector.load %arg4[%c2, %c0_7] : memref<9x256xf32, #tpu.memory_space<vmem>>, vector<1x256xf32>
    %18 = vector.broadcast %17 : vector<1x256xf32> to vector<4x256xf32>
    %19 = arith.mulf %16, %18 : vector<4x256xf32>
    %cst_8 = arith.constant 0.000000e+00 : f32
    %20 = vector.broadcast %cst_8 : f32 to vector<4x1xf32>
    %21 = vector.extract_strided_slice %1 {offsets = [0, 0], sizes = [4, 255], strides = [1, 1]} : vector<4x256xf32> to vector<4x255xf32>
    %22 = tpu.concatenate %20, %21 in 1 : vector<4x1xf32>, vector<4x255xf32> -> vector<4x256xf32>
    %c3 = arith.constant 3 : index
    %c0_9 = arith.constant 0 : index
    %23 = vector.load %arg4[%c3, %c0_9] : memref<9x256xf32, #tpu.memory_space<vmem>>, vector<1x256xf32>
    %24 = vector.broadcast %23 : vector<1x256xf32> to vector<4x256xf32>
    %25 = arith.mulf %22, %24 : vector<4x256xf32>
    %c4 = arith.constant 4 : index
    %c0_10 = arith.constant 0 : index
    %26 = vector.load %arg4[%c4, %c0_10] : memref<9x256xf32, #tpu.memory_space<vmem>>, vector<1x256xf32>
    %27 = vector.broadcast %26 : vector<1x256xf32> to vector<4x256xf32>
    %28 = arith.mulf %1, %27 : vector<4x256xf32>
    %29 = vector.extract_strided_slice %1 {offsets = [0, 1], sizes = [4, 255], strides = [1, 1]} : vector<4x256xf32> to vector<4x255xf32>
    %cst_11 = arith.constant 0.000000e+00 : f32
    %30 = vector.broadcast %cst_11 : f32 to vector<4x1xf32>
    %31 = tpu.concatenate %29, %30 in 1 : vector<4x255xf32>, vector<4x1xf32> -> vector<4x256xf32>
    %c5 = arith.constant 5 : index
    %c0_12 = arith.constant 0 : index
    %32 = vector.load %arg4[%c5, %c0_12] : memref<9x256xf32, #tpu.memory_space<vmem>>, vector<1x256xf32>
    %33 = vector.broadcast %32 : vector<1x256xf32> to vector<4x256xf32>
    %34 = arith.mulf %31, %33 : vector<4x256xf32>
    %35 = vector.extract_strided_slice %1 {offsets = [0, 15], sizes = [4, 241], strides = [1, 1]} : vector<4x256xf32> to vector<4x241xf32>
    %cst_13 = arith.constant 0.000000e+00 : f32
    %36 = vector.broadcast %cst_13 : f32 to vector<4x15xf32>
    %37 = tpu.concatenate %35, %36 in 1 : vector<4x241xf32>, vector<4x15xf32> -> vector<4x256xf32>
    %c6 = arith.constant 6 : index
    %c0_14 = arith.constant 0 : index
    %38 = vector.load %arg4[%c6, %c0_14] : memref<9x256xf32, #tpu.memory_space<vmem>>, vector<1x256xf32>
    %39 = vector.broadcast %38 : vector<1x256xf32> to vector<4x256xf32>
    %40 = arith.mulf %37, %39 : vector<4x256xf32>
    %41 = vector.extract_strided_slice %1 {offsets = [0, 16], sizes = [4, 240], strides = [1, 1]} : vector<4x256xf32> to vector<4x240xf32>
    %cst_15 = arith.constant 0.000000e+00 : f32
    %42 = vector.broadcast %cst_15 : f32 to vector<4x16xf32>
    %43 = tpu.concatenate %41, %42 in 1 : vector<4x240xf32>, vector<4x16xf32> -> vector<4x256xf32>
    %c7 = arith.constant 7 : index
    %c0_16 = arith.constant 0 : index
    %44 = vector.load %arg4[%c7, %c0_16] : memref<9x256xf32, #tpu.memory_space<vmem>>, vector<1x256xf32>
    %45 = vector.broadcast %44 : vector<1x256xf32> to vector<4x256xf32>
    %46 = arith.mulf %43, %45 : vector<4x256xf32>
    %47 = vector.extract_strided_slice %1 {offsets = [0, 17], sizes = [4, 239], strides = [1, 1]} : vector<4x256xf32> to vector<4x239xf32>
    %cst_17 = arith.constant 0.000000e+00 : f32
    %48 = vector.broadcast %cst_17 : f32 to vector<4x17xf32>
    %49 = tpu.concatenate %47, %48 in 1 : vector<4x239xf32>, vector<4x17xf32> -> vector<4x256xf32>
    %c8 = arith.constant 8 : index
    %c0_18 = arith.constant 0 : index
    %50 = vector.load %arg4[%c8, %c0_18] : memref<9x256xf32, #tpu.memory_space<vmem>>, vector<1x256xf32>
    %51 = vector.broadcast %50 : vector<1x256xf32> to vector<4x256xf32>
    %52 = arith.mulf %49, %51 : vector<4x256xf32>
    %53 = tpu.concatenate %7, %13, %19, %25, %28, %34, %40, %46, %52 in 0 : vector<4x256xf32>, vector<4x256xf32>, vector<4x256xf32>, vector<4x256xf32>, vector<4x256xf32>, vector<4x256xf32>, vector<4x256xf32>, vector<4x256xf32>, vector<4x256xf32> -> vector<36x256xf32>
    %c0_19 = arith.constant 0 : index
    %c0_20 = arith.constant 0 : index
    %54 = vector.load %arg2[%c0_19, %c0_20] : memref<16x36xf32, #tpu.memory_space<vmem>>, vector<16x36xf32>
    %cst_21 = arith.constant dense<0.000000e+00> : vector<16x256xf32>
    %55 = tpu.matmul %54, %53, %cst_21 {dimension_numbers = #tpu.dot_dimension_numbers<[1], [0], [0], [1], [0, 0, 1, 1], [], []>} : vector<16x36xf32>, vector<36x256xf32>, vector<16x256xf32> -> vector<16x256xf32>
    %c0_22 = arith.constant 0 : index
    %c0_23 = arith.constant 0 : index
    %56 = vector.load %arg3[%c0_22, %c0_23] : memref<16x1xf32, #tpu.memory_space<vmem>>, vector<16x1xf32>
    %57 = vector.broadcast %56 : vector<16x1xf32> to vector<16x256xf32>
    %58 = arith.addf %55, %57 : vector<16x256xf32>
    %c0_24 = arith.constant 0 : index
    %c0_25 = arith.constant 0 : index
    %c0_26 = arith.constant 0 : index
    %59 = vector.load %arg5[%c0_24, %c0_25, %c0_26] : memref<1x16x256xf32, #tpu.memory_space<vmem>>, vector<1x16x256xf32>
    %60 = vector.shape_cast %59 : vector<1x16x256xf32> to vector<16x256xf32>
    %61 = vector.shape_cast %58 : vector<16x256xf32> to vector<1x16x256xf32>
    tpu.vector_store %arg5[%c0_24, %c0_25, %c0_26], %61 {strides = array<i32>} : memref<1x16x256xf32, #tpu.memory_space<vmem>>, vector<1x16x256xf32>,
    return
  }
  func.func @transform_0(%arg0: i32) -> (i32, i32, i32) {
    %c0_i32 = arith.constant 0 : i32
    %c0_i32_0 = arith.constant 0 : i32
    %c0_i32_1 = arith.constant 0 : i32
    return %arg0, %c0_i32, %c0_i32_0 : i32, i32, i32
  }
  func.func @transform_1(%arg0: i32) -> (i32, i32) {
    %c0_i32 = arith.constant 0 : i32
    %c0_i32_0 = arith.constant 0 : i32
    %c0_i32_1 = arith.constant 0 : i32
    return %c0_i32, %c0_i32_0 : i32, i32
  }
  func.func @transform_2(%arg0: i32) -> (i32, i32) {
    %c0_i32 = arith.constant 0 : i32
    %c0_i32_0 = arith.constant 0 : i32
    %c0_i32_1 = arith.constant 0 : i32
    return %c0_i32, %c0_i32_0 : i32, i32
  }
  func.func @transform_3(%arg0: i32) -> (i32, i32) {
    %c0_i32 = arith.constant 0 : i32
    %c0_i32_0 = arith.constant 0 : i32
    %c0_i32_1 = arith.constant 0 : i32
    return %c0_i32, %c0_i32_0 : i32, i32
  }
  func.func @transform_4(%arg0: i32) -> (i32, i32, i32) {
    %c0_i32 = arith.constant 0 : i32
    %c0_i32_0 = arith.constant 0 : i32
    %c0_i32_1 = arith.constant 0 : i32
    return %arg0, %c0_i32, %c0_i32_0 : i32, i32, i32
  }
}

</mosaic_0001>

<bundles_post_ra>
// kernel: tile.0
= control target key start
LH: loop header
LB: loop body
LE: loop exit
PB: predicated region body
PF: predicated region fallthrough
CT: control target
= control target key end

     0   :  { %s34_s8 = smov 125   ;;  %vm7_vm0 = vcmask 7168   ;;  %s35_s11 = smov 126   ;;  %s61_s0 = inlined_call_operand.vmem [shape: f32[4,4], index: 0, kind: input, shape index: {}]   ;;  %s62_s1 = inlined_call_operand.vmem [shape: f32[16,1], index: 1, kind: output, shape index: {}]  }
   0x1   :  { %v4_v0 = vld [vmem:[%s61_s0] sm:$0xf]  ;;  %s33_s0 = smov 127  }
   0x2   :  { %5 = vst [vmem:[#allocation0] sm:$0xf] %v4_v0 }
   0x9   :  { %v9_v1 = vld [vmem:[#allocation0] sm:$0xf]  }
   0xa   :  { %v21_v2 = vld [vmem:[#allocation0] sm:$0xf]   ;;  %10 = vrot.lane.b32.xlu0 %v9_v1, %s33_s0 }
   0xb   :  { %22 = vrot.lane.b32.xlu1 %v21_v2, %s34_s8  ;;  %v6_v3 = vld [vmem:[#allocation0] sm:$0xf]  }
   0xc   :  { %v15_v4 = vld [vmem:[#allocation0] sm:$0xf]   ;;  %8 = vst.msk [vmem:[%s62_s1] ss:$4 sm:$0xf] %vm7_vm0, %v6_v3  }
   0xe   :  { %16 = vrot.lane.b32.xlu0 %v15_v4, %s35_s11 }
  0x7c   :  { %v11_v5 = vpop.permute.xlu0 %10  }
  0x7d   :  { %v23_v6 = vpop.permute.xlu1 %22   ;;  %27 = vst.msk [vmem:[%s62_s1 + $0x1] ss:$4 sm:$0xf] %vm7_vm0, %v11_v5  }
  0x7e   :  { %29 = vst.msk [vmem:[%s62_s1 + $0x3] ss:$4 sm:$0xf] %vm7_vm0, %v23_v6  }
  0x80   :  { %v17_v7 = vpop.permute.xlu0 %16  }
  0x81   :  { %28 = vst.msk [vmem:[%s62_s1 + $0x2] ss:$4 sm:$0xf] %vm7_vm0, %v17_v7  }

// kernel: tile.8
= control target key start
LH: loop header
LB: loop body
LE: loop exit
PB: predicated region body
PF: predicated region fallthrough
CT: control target
= control target key end

     0   :  { %s22_s0 = inlined_call_operand.vmem [shape: f32[4], index: 0, kind: input, shape index: {}]   ;;  %s23_s1 = inlined_call_operand.vmem [shape: f32[4,4], index: 1, kind: output, shape index: {}]  }
   0x1   :  { %v4_v0 = vld [vmem:[%s22_s0] ss:$0 sm:$0xff] }
   0x2   :  { %5 = vst [vmem:[%s23_s1] sm:$0xf] %v4_v0 }

// kernel: upsample_forward.1
= control target key start
LH: loop header
LB: loop body
LE: loop exit
PB: predicated region body
PF: predicated region fallthrough
CT: control target
= control target key end

     0   :  { %s708_s15 = smov 0   ;;  %s825_s0 = inlined_call_operand.vmem [shape: f32[2,4,256], index: 0, kind: input, shape index: {}]   ;;  %s826_s1 = inlined_call_operand.vmem [shape: f32[16,36], index: 1, kind: input, shape index: {}]   ;;  %s827_s2 = inlined_call_operand.vmem [shape: f32[16,1], index: 2, kind: input, shape index: {}]   ;;  %s828_s3 = inlined_call_operand.vmem [shape: f32[9,256], index: 3, kind: input, shape index: {}]   ;;  %s829_s4 = inlined_call_operand.vmem [shape: f32[2,16,256], index: 4, kind: output, shape index: {}]  }
   0x1 LB: > { %s605_s16 = sadd.s32 4294967295, %s671_s15   ;;  %p609_p0 = scmp.ge.s32.totalorder %s671_s15, 1  ;;  %s671_s15 = sphi %s708_s15, %s14_s15  }
   0x2   : > { %p162_p1 = scmp.lt.s32.totalorder %s671_s15, 3 }
   0x4   : > { %p163_p2 = pnand %p609_p0, %p162_p1 }
   0x5   : > { %p188_p3 = scmp.lt.s32.totalorder (!%p163_p2), %s605_s16, 1  ;;  %s673_s21 = smov (!%p163_p2), 1   ;;  %v679_v2 = vmov (!%p163_p2), 0.0   ;;  %v681_v3 = vmov (!%p163_p2), 0   ;;  %v445_v4 = vld [vmem:[%s827_s2 + $0x8] sm:$0xff] (!%p163_p2)  ;;  %v444_v5 = vld [vmem:[%s827_s2] sm:$0xff] (!%p163_p2)  ;;  %v212_v6 = vlaneseq (!%p163_p2) }
   0x6   : > { %166 = sbr.rel (%p163_p2) target bundleno = 384 (0x180), region = 36  ;;  %s674_s22 = smov (!%p163_p2), 16   ;;  %533 = vmatprep.mubr.f32.mxu0 (!%p163_p2), %v679_v2  ;;  %539 = vmatprep.mubr.f32.mxu1 (!%p163_p2), %v679_v2  ;;  %v616_v11 = vld [vmem:[%s828_s3 + $0x3] ss:$8 sm:$0x3] (!%p163_p2)  ;;  %vm276_vm0 = vcmask (!%p163_p2), 7168  }
   0x7   : > { %s675_s23 = smov (!%p163_p2), 17   ;;  %s676_s24 = smov (!%p163_p2), 15   ;;  %663 = vset.pattern.permute.xlu1 (!%p163_p2), %v681_v3  ;;  %662 = vset.pattern.permute.xlu0 (!%p163_p2), %v681_v3  ;;  %v213_v7 = vshrl.u32 (!%p163_p2), %v212_v6, 7  ;;  %v614_v12 = vld [vmem:[%s828_s3 + $0x1] ss:$8 sm:$0x3] (!%p163_p2) }
   0x8   : > { %s677_s25 = smov (!%p163_p2), 112   ;;  %s678_s26 = smov (!%p163_p2), 127   ;;  %vm228_vm1 = vcmask (!%p163_p2), 130048   ;;  %vm205_vm2 = vcmask (!%p163_p2), 138240   ;;  %vm252_vm3 = vcmask (!%p163_p2), 121856   ;;  %vm314_vm4 = vcmask (!%p163_p2), 1039360  }
   0x9   : > { %s680_s27 = smov (!%p163_p2), 113   ;;  %s682_s28 = smov (!%p163_p2), 111   ;;  %v740_v10 = vsub.s32 (!%p163_p2), 0, %v213_v7  ;;  %v748_v13 = vsub.s32 (!%p163_p2), 1, %v213_v7  ;;  %vm433_vm5 = vcmask (!%p163_p2), 1043456   ;;  %vm362_vm6 = vcmask (!%p163_p2), 916480  }
   0xa   : > { %v210_v18 = vld [vmem:[%s828_s3] ss:$8 sm:$0x3] (!%p163_p2)  ;;  %v615_v24 = vld [vmem:[%s828_s3 + $0x2] ss:$8 sm:$0x3] (!%p163_p2) }
   0xb   : > { %v287_v16 = vrot.slane (!%p163_p2), %v616_v11, %v740_v10  ;;  %v239_v17 = vrot.slane (!%p163_p2), %v614_v12, %v740_v10  ;;  %v291_v21 = vrot.slane (!%p163_p2), %v616_v11, %v748_v13  ;;  %v243_v22 = vrot.slane (!%p163_p2), %v614_v12, %v748_v13  ;;  %v617_v29 = vld [vmem:[%s828_s3 + $0x4] ss:$8 sm:$0x3] (!%p163_p2)  ;;  %v618_v45 = vld [vmem:[%s828_s3 + $0x5] ss:$8 sm:$0x3] (!%p163_p2) }
   0xc   : > { %v215_v25 = vrot.slane (!%p163_p2), %v210_v18, %v740_v10  ;;  %v219_v26 = vrot.slane (!%p163_p2), %v210_v18, %v748_v13  ;;  %v263_v36 = vrot.slane (!%p163_p2), %v615_v24, %v740_v10  ;;  %v267_v37 = vrot.slane (!%p163_p2), %v615_v24, %v748_v13  ;;  %v620_v54 = vld [vmem:[%s828_s3 + $0x7] ss:$8 sm:$0x3] (!%p163_p2)  ;;  %v619_v6 = vld [vmem:[%s828_s3 + $0x6] ss:$8 sm:$0x3] (!%p163_p2) }
   0xd   : > { %s831_s16 = smov (!%p188_p3, %s605_s16), 1  ;;  %v302_v39 = vrot.slane %v617_v29, %v740_v10  ;;  %v306_v40 = vrot.slane %v617_v29, %v748_v13  ;;  %v329_v55 = vrot.slane %v618_v45, %v748_v13  ;;  %v377_v3 = vrot.slane %v620_v54, %v748_v13 }
   0xe   : > { %s628_s17 = sshll.u32 %s831_s16, 3  ;;  %vm338_vm7 = vcmask 924672   ;;  %vm386_vm8 = vcmask 908288   ;;  %vm456_vm9 = vcmask 293888   ;;  %s629_s5 = sshll.u32 %s831_s16, 5 }
   0xf   : > { %s192_s20 = scalar_lea.vmem %s825_s0, %s628_s17  ;;  %v307_v56 = vcombine.low %v302_v39, %v306_v40  ;;  %s197_s8 = scalar_lea.vmem %s829_s4, %s629_s5 }
  0x10   : > { %v722_v0 = vld [vmem:[%s192_s20] sm:$0xff] }
  0x11   : > { %272 = vrot.lane.b32.xlu1 %v722_v0, %s673_s21  ;;  %224 = vrot.lane.b32.xlu0 %v722_v0, %s674_s22  ;;  %v200_v1 = vcombine.high %v722_v0, %v722_v0  ;;  %v309_v12 = vmul.f32 %v307_v56, %v722_v0 }
  0x15   : > { %201 = vrot.lane.b32.xlu0 %v722_v0, %s675_s23  ;;  %274 = vrot.lane.b32.xlu1 %v200_v1, %s673_s21 }
  0x19   : > { %203 = vrot.lane.b32.xlu1 %v200_v1, %s675_s23  ;;  %226 = vrot.lane.b32.xlu0 %v200_v1, %s674_s22 }
  0x1d   : > { %250 = vrot.lane.b32.xlu1 %v200_v1, %s676_s24  ;;  %248 = vrot.lane.b32.xlu0 %v722_v0, %s676_s24 }
  0x21   : > { %360 = vrot.lane.b32.xlu1 %v200_v1, %s677_s25  ;;  %312 = vrot.lane.b32.xlu0 %v200_v1, %s678_s26 }
  0x25   : > { %358 = vrot.lane.b32.xlu1 %v722_v0, %s677_s25  ;;  %310 = vrot.lane.b32.xlu0 %v722_v0, %s678_s26 }
  0x29   : > { %334 = vrot.lane.b32.xlu1 %v722_v0, %s680_s27  ;;  %336 = vrot.lane.b32.xlu0 %v200_v1, %s680_s27 }
  0x2d   : > { %382 = vrot.lane.b32.xlu1 %v722_v0, %s682_s28  ;;  %384 = vrot.lane.b32.xlu0 %v200_v1, %s682_s28 }
  0x31   : > { %453 = vperm.xlu1 %663, %v445_v4   ;;  %448 = vperm.xlu0 %662, %v444_v5   ;;  %v373_v4 = vrot.slane %v620_v54, %v740_v10  ;;  %v325_v5 = vrot.slane %v618_v45, %v740_v10  ;;  %v443_v45 = vld [vmem:[%s826_s1 + $0x8] sm:$0xff] }
  0x83   : > { %v273_v8 = vpop.permute.xlu1 %272  ;;  %v225_v9 = vpop.permute.xlu0 %224 }
  0x84   : > { %v280_v19 = vsel %vm276_vm0, 0.0, %v273_v8  ;;  %v232_v20 = vsel %vm228_vm1, 0.0, %v225_v9 }
  0x85   : > { %v294_v30 = vmul.f32 %v287_v16, %v280_v19  ;;  %v246_v31 = vmul.f32 %v239_v17, %v232_v20  ;;  %v349_v16 = vrot.slane %v619_v6, %v740_v10  ;;  %v353_v20 = vrot.slane %v619_v6, %v748_v13 }
  0x87   : > { %v202_v14 = vpop.permute.xlu0 %201  ;;  %v275_v15 = vpop.permute.xlu1 %274  ;;  %v414_v46 = vrot.slane %v294_v30, 4  ;;  %v408_v47 = vrot.slane %v246_v31, 4 }
  0x88   : > { %v277_v23 = vsel %vm276_vm0, %v273_v8, %v275_v15  ;;  %v209_v32 = vsel %vm205_vm2, 0.0, %v202_v14 }
  0x89   : > { %v295_v34 = vmul.f32 %v291_v21, %v277_v23  ;;  %v222_v41 = vmul.f32 %v215_v25, %v209_v32  ;;  %v621_v21 = vld [vmem:[%s828_s3 + $0x10] ss:$8 sm:$0x3]  ;;  %v419_v25 = vcombine.high %v309_v12, %v309_v12 }
  0x8b   : > { %v204_v27 = vpop.permute.xlu1 %203  ;;  %v227_v28 = vpop.permute.xlu0 %226  ;;  %v415_v50 = vrot.slane %v295_v34, 4  ;;  %v434_v61 = vsel %vm433_vm5, %v222_v41, %v408_v47 }
  0x8c   : > { %v229_v33 = vsel %vm228_vm1, %v225_v9, %v227_v28  ;;  %v206_v38 = vsel %vm205_vm2, %v202_v14, %v204_v27  ;;  %v401_v28 = vrot.slane %v621_v21, %v748_v13 }
  0x8d   : > { %v247_v35 = vmul.f32 %v243_v22, %v229_v33  ;;  %v223_v51 = vmul.f32 %v219_v26, %v206_v38  ;;  %v397_v33 = vrot.slane %v621_v21, %v740_v10  ;;  %v442_v10 = vld [vmem:[%s826_s1] sm:$0xff] }
  0x8f   : > { %v409_v42 = vrot.slane %v247_v35, 4  ;;  %v251_v43 = vpop.permute.xlu1 %250  ;;  %v249_v44 = vpop.permute.xlu0 %248 }
  0x90   : > { %v253_v48 = vsel %vm252_vm3, %v249_v44, %v251_v43  ;;  %v256_v49 = vsel %vm252_vm3, 0.0, %v249_v44 }
  0x91   : > { %v270_v52 = vmul.f32 %v263_v36, %v256_v49  ;;  %v271_v53 = vmul.f32 %v267_v37, %v253_v48  ;;  %v435_v59 = vsel %vm433_vm5, %v223_v51, %v409_v42 }
  0x93   : > { %v361_v57 = vpop.permute.xlu1 %360  ;;  %v313_v58 = vpop.permute.xlu0 %312  ;;  %v437_v60 = vsel %vm433_vm5, %v271_v53, %v415_v50  ;;  %v436_v62 = vsel %vm433_vm5, %v270_v52, %v414_v46 }
  0x94   : > { %v318_v63 = vsel %vm314_vm4, %v313_v58, 0.0  ;;  %v630_v1 = vpack.c.bf16 %v437_v60, %v435_v59  ;;  %v632_v2 = vpack.c.bf16 %v436_v62, %v434_v61  ;;  %v366_v7 = vsel %vm362_vm6, %v361_v57, 0.0 }
  0x95   : > { %v333_v8 = vmul.f32 %v329_v55, %v318_v63  ;;  %v381_v17 = vmul.f32 %v377_v3, %v366_v7 }
  0x96   : > { %631 = vmatprep.subr.bf16.mxu0 %v630_v1  ;;  %638 = vmatprep.subr.bf16.mxu1 %v630_v1 }
  0x97   : > { %v359_v9 = vpop.permute.xlu1 %358  ;;  %633 = vmatpush1.bf16.msra.mxu0 %v632_v2  ;;  %641 = vmatpush1.bf16.msra.mxu1 %v632_v2  ;;  %v311_v11 = vpop.permute.xlu0 %310  ;;  %v424_v22 = vrot.slane %v333_v8, 4  ;;  %v430_v29 = vrot.slane %v381_v17, 4 }
  0x98   : > { %v363_v14 = vsel %vm362_vm6, %v359_v9, %v361_v57  ;;  %v315_v15 = vsel %vm314_vm4, %v311_v11, %v313_v58 }
  0x99   : > { %v380_v18 = vmul.f32 %v373_v4, %v363_v14  ;;  %v332_v19 = vmul.f32 %v325_v5, %v315_v15  ;;  %v439_v35 = vsel %vm433_vm5, %v419_v25, %v424_v22 }
  0x9b   : > { %v423_v23 = vrot.slane %v332_v19, 4  ;;  %v335_v24 = vpop.permute.xlu1 %334  ;;  %v337_v0 = vpop.permute.xlu0 %336  ;;  %v429_v30 = vrot.slane %v380_v18, 4 }
  0x9c   : > { %v339_v26 = vsel %vm338_vm7, %v335_v24, %v337_v0  ;;  %v342_v27 = vsel %vm338_vm7, %v337_v0, 0.0 }
  0x9d   : > { %v356_v31 = vmul.f32 %v349_v16, %v339_v26  ;;  %v357_v32 = vmul.f32 %v353_v20, %v342_v27  ;;  %v438_v38 = vsel %vm433_vm5, %v309_v12, %v423_v23 }
  0x9f   : > { %v383_v34 = vpop.permute.xlu1 %382  ;;  %v441_v36 = vsel %vm433_vm5, %v357_v32, %v430_v29  ;;  %v385_v37 = vpop.permute.xlu0 %384  ;;  %v440_v39 = vsel %vm433_vm5, %v356_v31, %v429_v30 }
  0xa0   : > { %v634_v40 = vpack.c.bf16 %v441_v36, %v439_v35  ;;  %v387_v41 = vsel %vm386_vm8, %v383_v34, %v385_v37  ;;  %v390_v42 = vsel %vm386_vm8, %v385_v37, 0.0  ;;  %v636_v13 = vpack.c.bf16 %v440_v39, %v438_v38 }
  0xa1   : > { %v405_v43 = vmul.f32 %v401_v28, %v390_v42  ;;  %v404_v44 = vmul.f32 %v397_v33, %v387_v41 }
  0xa2   : > { %635 = vmatprep.subr.bf16.mxu0 %v634_v40  ;;  %639 = vmatprep.subr.bf16.mxu1 %v634_v40 }
  0xa3   : > { %637 = vmatpush1.bf16.msra.mxu0 %v636_v13  ;;  %642 = vmatpush1.bf16.msra.mxu1 %v636_v13 }
  0xa4   : > { %622 = vmatprep.subr.msk.mxu0 %vm433_vm5, %v405_v43  ;;  %640 = vmatprep.subr.msk.mxu1 %vm433_vm5, %v405_v43 }
  0xa7   : > { %623 = vmatpush1.msk.msra.mxu0 %vm433_vm5, %v404_v44  ;;  %643 = vmatpush1.msk.msra.mxu1 %vm433_vm5, %v404_v44 }
  0xa8   : > { %624 = vmatmul.mubr.msk.f32.vlgmr.msra.gmra.mrb[0].mxu0 %vm456_vm9, %v442_v10  ;;  %625 = vmatmul.mubr.msk.f32.vlgmr.msra.gmra.mrb[0].mxu1 %vm456_vm9, %v443_v45 }
  0xb0   : > { %v454_v46 = vpop.permute.xlu1 %453  ;;  %v449_v47 = vpop.permute.xlu0 %448 }
 0x17b   : > { %v535_v48 = vpop.f32.mrb[0].mxu0  ;;  %v541_v49 = vpop.f32.mrb[0].mxu1 }
 0x17c   : > { %v542_v50 = vadd.f32 %v541_v49, %v454_v46  ;;  %v536_v51 = vadd.f32 %v535_v48, %v449_v47  ;;  %v537_v52 = vpop.f32.mrb[1].mxu0  ;;  %v543_v53 = vpop.f32.mrb[1].mxu1 }
 0x17d   : > { %v538_v54 = vadd.f32 %v537_v52, %v449_v47  ;;  %v544_v55 = vadd.f32 %v543_v53, %v454_v46 }
 0x17e   : > { %548 = vst [vmem:[%s197_s8 + $0x10] sm:$0xff] %v542_v50  ;;  %546 = vst [vmem:[%s197_s8] sm:$0xff] %v536_v51 }
 0x17f   : > { %547 = vst [vmem:[%s197_s8 + $0x8] sm:$0xff] %v538_v54  ;;  %549 = vst [vmem:[%s197_s8 + $0x18] sm:$0xff] %v544_v55 }
 0x180 PF: > { %s14_s15 = sadd.s32 1, %s671_s15  }
 0x181   : > { %p11_p4 = scmp.ge.s32.totalorder %s14_s15, 4  }
 0x183   :  { %13 = sbr.rel (!%p11_p4) target bundleno = 1 (0x1), region = 74 }

</bundles_post_ra>
